<compile_context>
chip_gen: v7x
topology: tpu7x:2x2x1
jax: 0.10.0
libtpu: 0.0.40
codegen_flags: <defaults>
</compile_context>

<pallas_src>
import functools

import jax
import jax.numpy as jnp
import numpy as np
from jax.experimental import pallas as pl
from jax.experimental.pallas import tpu as pltpu

TILE_B = 2048  # batch tile on the lane axis (tiny VMEM footprint: ~32 KiB of x)


def _round_up(n, m):
    return ((n + m - 1) // m) * m


def _xavier_uniform(key, shape, fan_in, fan_out, dtype=jnp.float32):
    # Matches torch.nn.init.xavier_uniform_ (gain=1.0).
    bound = float(np.sqrt(6.0 / (fan_in + fan_out)))
    return jax.random.uniform(key, shape, dtype=dtype, minval=-bound, maxval=bound)


def _mlp_kernel(x_ref, w1_ref, b1_ref, w2_ref, b2_ref, w3_ref, b3_ref, o_ref):
    # Transposed ("batch on lanes") layout: x tile is (4, TILE_B).
    # Layer 1: (64, 4) @ (4, TB) -> (64, TB), + bias, ReLU.
    h1 = jnp.dot(w1_ref[...], x_ref[...], preferred_element_type=jnp.float32)
    h1 = jnp.maximum(h1 + b1_ref[...], 0.0)
    # Layer 2: (64, 64) @ (64, TB) -> (64, TB), + bias, ReLU.
    h2 = jnp.dot(w2_ref[...], h1, preferred_element_type=jnp.float32)
    h2 = jnp.maximum(h2 + b2_ref[...], 0.0)
    # Layer 3 (out_features = 1): VPU multiply + cross-sublane reduce instead of
    # an M=1 MXU matmul.  Result (1, TB) is a lane-dense, unmasked store.
    out = jnp.sum(h2 * w3_ref[...], axis=0, keepdims=True) + b3_ref[...]
    o_ref[...] = out.astype(o_ref.dtype)


@jax.jit
def model_forward(x, params):
    """x: (B, 4) float32 -> (B, 1) float32 (same semantics as the PyTorch model)."""
    w1t, b1, w2t, b2, w3c, b3 = params
    B = x.shape[0]

    tb = min(TILE_B, _round_up(B, 128))
    Bp = _round_up(B, tb)

    # Put the batch on the lane (last) axis and zero-pad to a tile multiple.
    x_t = jnp.zeros((4, Bp), jnp.float32).at[:, :B].set(x.T)

    grid = (Bp // tb,)
    resident = lambda i: (0, 0)  # weights/biases: same block every step -> VMEM-resident

    out_t = pl.pallas_call(
        _mlp_kernel,
        out_shape=jax.ShapeDtypeStruct((1, Bp), jnp.float32),
        grid=grid,
        in_specs=[
            pl.BlockSpec((4, tb), lambda i: (0, i)),   # x tile (batch on lanes)
            pl.BlockSpec((64, 4), resident),           # W1 (out, in)
            pl.BlockSpec((64, 1), resident),           # b1 (broadcast along lanes)
            pl.BlockSpec((64, 64), resident),          # W2 (out, in)
            pl.BlockSpec((64, 1), resident),           # b2
            pl.BlockSpec((64, 1), resident),           # w3 column
            pl.BlockSpec((1, 1), resident),            # b3
        ],
        out_specs=pl.BlockSpec((1, tb), lambda i: (0, i)),
        compiler_params=pltpu.CompilerParams(
            dimension_semantics=("parallel",)),        # megacore split on v7x
    )(x_t, w1t, b1, w2t, b2, w3c, b3)

    return out_t[0, :B][:, None]


def init_params(key):
    k1, k2, k3 = jax.random.split(key, 3)
    # Stored in the kernel's layout:
    #   W1: (64, 4)  == PyTorch weight shape (out, in)
    #   W2: (64, 64)
    #   w3: (64, 1)  (column vector of the PyTorch (1, 64) weight)
    w1t = _xavier_uniform(k1, (64, 4), fan_in=4, fan_out=64)
    b1 = jnp.zeros((64, 1), jnp.float32)
    w2t = _xavier_uniform(k2, (64, 64), fan_in=64, fan_out=64)
    b2 = jnp.zeros((64, 1), jnp.float32)
    w3c = _xavier_uniform(k3, (64, 1), fan_in=64, fan_out=1)
    b3 = jnp.zeros((1, 1), jnp.float32)
    return (w1t, b1, w2t, b2, w3c, b3)


def _reference_forward(x, params):
    w1t, b1, w2t, b2, w3c, b3 = params
    h1 = jnp.maximum(x @ w1t.T + b1.T, 0.0)
    h2 = jnp.maximum(h1 @ w2t.T + b2.T, 0.0)
    return h2 @ w3c + b3.T


if __name__ == "__main__":
    key = jax.random.PRNGKey(0)
    pkey, xkey = jax.random.split(key)
    params = init_params(pkey)

    # Small batch of 4-dim Tetris state features (B, 4); second case exercises
    # the multi-tile grid + padding path.
    for B in (8, 5000):
        x = jax.random.normal(jax.random.fold_in(xkey, B), (B, 4), dtype=jnp.float32)
        out = jax.block_until_ready(model_forward(x, params))
        ref = _reference_forward(x, params)
        assert out.shape == (B, 1), out.shape
        np.testing.assert_allclose(np.asarray(out), np.asarray(ref),
                                   rtol=1e-5, atol=1e-5)
    print("KERNEL_OK")
</pallas_src>

<mosaic_0001>
module attributes {stable_mosaic.version = 11 : i64} {
  func.func @_mlp_kernel(%arg0: i32, %arg1: memref<4x128xf32, #tpu.memory_space<vmem>>, %arg2: memref<64x4xf32, #tpu.memory_space<vmem>>, %arg3: memref<64x1xf32, #tpu.memory_space<vmem>>, %arg4: memref<64x64xf32, #tpu.memory_space<vmem>>, %arg5: memref<64x1xf32, #tpu.memory_space<vmem>>, %arg6: memref<64x1xf32, #tpu.memory_space<vmem>>, %arg7: memref<1x1xf32, #tpu.memory_space<vmem>>, %arg8: memref<1x128xf32, #tpu.memory_space<vmem>>) attributes {dimension_semantics = [#tpu.dimension_semantics<parallel>], iteration_bounds = array<i64: 1>, scalar_prefetch = 0 : i64, scratch_operands = 0 : i64, tpu.core_type = #tpu.core_type<tc>, window_params = [{transform_indices = @transform_0, window_bounds = array<i64: 4, 128>}, {pipeline_mode = #tpu.pipeline_mode<synchronous>, transform_indices = @transform_1, window_bounds = array<i64: 64, 4>}, {pipeline_mode = #tpu.pipeline_mode<synchronous>, transform_indices = @transform_2, window_bounds = array<i64: 64, 1>}, {pipeline_mode = #tpu.pipeline_mode<synchronous>, transform_indices = @transform_3, window_bounds = array<i64: 64, 64>}, {pipeline_mode = #tpu.pipeline_mode<synchronous>, transform_indices = @transform_4, window_bounds = array<i64: 64, 1>}, {pipeline_mode = #tpu.pipeline_mode<synchronous>, transform_indices = @transform_5, window_bounds = array<i64: 64, 1>}, {pipeline_mode = #tpu.pipeline_mode<synchronous>, transform_indices = @transform_6, window_bounds = array<i64: 1, 1>}, {transform_indices = @transform_7, window_bounds = array<i64: 1, 128>}]} {
    %c0 = arith.constant 0 : index
    %c0_0 = arith.constant 0 : index
    %0 = vector.load %arg2[%c0, %c0_0] : memref<64x4xf32, #tpu.memory_space<vmem>>, vector<64x4xf32>
    %c0_1 = arith.constant 0 : index
    %c0_2 = arith.constant 0 : index
    %1 = vector.load %arg1[%c0_1, %c0_2] : memref<4x128xf32, #tpu.memory_space<vmem>>, vector<4x128xf32>
    %cst = arith.constant dense<0.000000e+00> : vector<64x128xf32>
    %2 = tpu.matmul %0, %1, %cst {dimension_numbers = #tpu.dot_dimension_numbers<[1], [0], [0], [1], [0, 0, 1, 1], [], []>} : vector<64x4xf32>, vector<4x128xf32>, vector<64x128xf32> -> vector<64x128xf32>
    %c0_3 = arith.constant 0 : index
    %c0_4 = arith.constant 0 : index
    %3 = vector.load %arg3[%c0_3, %c0_4] : memref<64x1xf32, #tpu.memory_space<vmem>>, vector<64x1xf32>
    %4 = vector.broadcast %3 : vector<64x1xf32> to vector<64x128xf32>
    %5 = arith.addf %2, %4 : vector<64x128xf32>
    %cst_5 = arith.constant 0.000000e+00 : f32
    %6 = vector.broadcast %cst_5 : f32 to vector<64x128xf32>
    %7 = arith.maximumf %5, %6 : vector<64x128xf32>
    %c0_6 = arith.constant 0 : index
    %c0_7 = arith.constant 0 : index
    %8 = vector.load %arg4[%c0_6, %c0_7] : memref<64x64xf32, #tpu.memory_space<vmem>>, vector<64x64xf32>
    %cst_8 = arith.constant dense<0.000000e+00> : vector<64x128xf32>
    %9 = tpu.matmul %8, %7, %cst_8 {dimension_numbers = #tpu.dot_dimension_numbers<[1], [0], [0], [1], [0, 0, 1, 1], [], []>} : vector<64x64xf32>, vector<64x128xf32>, vector<64x128xf32> -> vector<64x128xf32>
    %c0_9 = arith.constant 0 : index
    %c0_10 = arith.constant 0 : index
    %10 = vector.load %arg5[%c0_9, %c0_10] : memref<64x1xf32, #tpu.memory_space<vmem>>, vector<64x1xf32>
    %11 = vector.broadcast %10 : vector<64x1xf32> to vector<64x128xf32>
    %12 = arith.addf %9, %11 : vector<64x128xf32>
    %cst_11 = arith.constant 0.000000e+00 : f32
    %13 = vector.broadcast %cst_11 : f32 to vector<64x128xf32>
    %14 = arith.maximumf %12, %13 : vector<64x128xf32>
    %c0_12 = arith.constant 0 : index
    %c0_13 = arith.constant 0 : index
    %15 = vector.load %arg6[%c0_12, %c0_13] : memref<64x1xf32, #tpu.memory_space<vmem>>, vector<64x1xf32>
    %16 = vector.broadcast %15 : vector<64x1xf32> to vector<64x128xf32>
    %17 = arith.mulf %14, %16 : vector<64x128xf32>
    %cst_14 = arith.constant dense<0.000000e+00> : vector<128xf32>
    %18 = vector.multi_reduction <add>, %17, %cst_14 [0] : vector<64x128xf32> to vector<128xf32>
    %19 = vector.shape_cast %18 : vector<128xf32> to vector<1x128xf32>
    %c0_15 = arith.constant 0 : index
    %c0_16 = arith.constant 0 : index
    %20 = vector.load %arg7[%c0_15, %c0_16] : memref<1x1xf32, #tpu.memory_space<vmem>>, vector<1x1xf32>
    %21 = vector.broadcast %20 : vector<1x1xf32> to vector<1x128xf32>
    %22 = arith.addf %19, %21 : vector<1x128xf32>
    %c0_17 = arith.constant 0 : index
    %c0_18 = arith.constant 0 : index
    %23 = vector.load %arg8[%c0_17, %c0_18] : memref<1x128xf32, #tpu.memory_space<vmem>>, vector<1x128xf32>
    tpu.vector_store %arg8[%c0_17, %c0_18], %22 {strides = array<i32>} : memref<1x128xf32, #tpu.memory_space<vmem>>, vector<1x128xf32>,
    return
  }
  func.func @transform_0(%arg0: i32) -> (i32, i32) {
    %c0_i32 = arith.constant 0 : i32
    %c0_i32_0 = arith.constant 0 : i32
    return %c0_i32, %arg0 : i32, i32
  }
  func.func @transform_1(%arg0: i32) -> (i32, i32) {
    %c0_i32 = arith.constant 0 : i32
    %c0_i32_0 = arith.constant 0 : i32
    %c0_i32_1 = arith.constant 0 : i32
    return %c0_i32, %c0_i32_0 : i32, i32
  }
  func.func @transform_2(%arg0: i32) -> (i32, i32) {
    %c0_i32 = arith.constant 0 : i32
    %c0_i32_0 = arith.constant 0 : i32
    %c0_i32_1 = arith.constant 0 : i32
    return %c0_i32, %c0_i32_0 : i32, i32
  }
  func.func @transform_3(%arg0: i32) -> (i32, i32) {
    %c0_i32 = arith.constant 0 : i32
    %c0_i32_0 = arith.constant 0 : i32
    %c0_i32_1 = arith.constant 0 : i32
    return %c0_i32, %c0_i32_0 : i32, i32
  }
  func.func @transform_4(%arg0: i32) -> (i32, i32) {
    %c0_i32 = arith.constant 0 : i32
    %c0_i32_0 = arith.constant 0 : i32
    %c0_i32_1 = arith.constant 0 : i32
    return %c0_i32, %c0_i32_0 : i32, i32
  }
  func.func @transform_5(%arg0: i32) -> (i32, i32) {
    %c0_i32 = arith.constant 0 : i32
    %c0_i32_0 = arith.constant 0 : i32
    %c0_i32_1 = arith.constant 0 : i32
    return %c0_i32, %c0_i32_0 : i32, i32
  }
  func.func @transform_6(%arg0: i32) -> (i32, i32) {
    %c0_i32 = arith.constant 0 : i32
    %c0_i32_0 = arith.constant 0 : i32
    %c0_i32_1 = arith.constant 0 : i32
    return %c0_i32, %c0_i32_0 : i32, i32
  }
  func.func @transform_7(%arg0: i32) -> (i32, i32) {
    %c0_i32 = arith.constant 0 : i32
    %c0_i32_0 = arith.constant 0 : i32
    return %c0_i32, %arg0 : i32, i32
  }
}

</mosaic_0001>

<bundles_post_ra>
// kernel: model_forward.1
= control target key start
LH: loop header
LB: loop body
LE: loop exit
PB: predicated region body
PF: predicated region fallthrough
CT: control target
= control target key end

     0   :  { %vm110_vm0 = vcmask 1043456   ;;  %vm85_vm1 = vcmask 31744   ;;  %v617_v3 = vmov 0   ;;  %vm283_vm2 = vcmask 523264   ;;  %s805_s0 = inlined_call_operand.vmem [shape: f32[4,128], index: 0, kind: input, shape index: {}]   ;;  %s806_s1 = inlined_call_operand.vmem [shape: f32[64,4], index: 1, kind: input, shape index: {}]   ;;  %s807_s6 = inlined_call_operand.<no memory space> [shape: f32[1,1], index: 6, kind: input, shape index: {}]   ;;  %s808_s2 = inlined_call_operand.vmem [shape: f32[64,1], index: 2, kind: input, shape index: {}]   ;;  %s809_s4 = inlined_call_operand.vmem [shape: f32[64,1], index: 4, kind: input, shape index: {}]   ;;  %s810_s5 = inlined_call_operand.vmem [shape: f32[64,1], index: 5, kind: input, shape index: {}]   ;;  %s811_s3 = inlined_call_operand.vmem [shape: f32[64,64], index: 3, kind: input, shape index: {}]   ;;  %s812_s7 = inlined_call_operand.vmem [shape: f32[1,128], index: 7, kind: output, shape index: {}]  }
   0x1   :  { %v36_v0 = vld [vmem:[%s805_s0] sm:$0xf]  ;;  %v29_v2 = vld [vmem:[%s806_s1 + $0x8] sm:$0xff]  ;;  %615 = vset.pattern.permute.xlu0 %v617_v3  ;;  %616 = vset.pattern.permute.xlu1 %v617_v3  ;;  %v12_v4 = vstv %s807_s6  ;;  %v30_v5 = vld [vmem:[%s806_s1 + $0x10] sm:$0xff] }
   0x2   :  { %v28_v1 = vld [vmem:[%s806_s1] sm:$0xff]  ;;  %548 = vmatprep.subr.msk.mxu0 %vm110_vm0, %v36_v0  ;;  %13 = vst [vmem:[#allocation2] sm:$0x1] %v12_v4  ;;  %v39_v7 = vld [vmem:[%s808_s2 + $0x10] sm:$0xff]  ;;  %v31_v8 = vld [vmem:[%s806_s1 + $0x18] sm:$0xff] }
   0x3   :  { %550 = vmatprep.mubr.msk.f32.mxu0 %vm85_vm1, %v28_v1  ;;  %549 = vmatpush3.msk.msra.mxu0 %vm110_vm0, %v36_v0  ;;  %v37_v6 = vld [vmem:[%s808_s2] sm:$0xff]  ;;  %v38_v10 = vld [vmem:[%s808_s2 + $0x8] sm:$0xff]  ;;  %v40_v11 = vld [vmem:[%s808_s2 + $0x18] sm:$0xff] }
   0x4   :  { %551 = vmatmul.mubr.msk.f32.vlgmr.msra.gmra.mrb[0].mxu0 %vm85_vm1, %v29_v2  ;;  %47 = vperm.xlu0 %615, %v37_v6   ;;  %v32_v9 = vld [vmem:[%s806_s1 + $0x20] sm:$0xff]  ;;  %v33_v12 = vld [vmem:[%s806_s1 + $0x28] sm:$0xff]  ;;  %v34_v13 = vld [vmem:[%s806_s1 + $0x30] sm:$0xff] }
   0x5   :  { %553 = vmatprep.mubr.msk.f32.mxu0 %vm85_vm1, %v30_v5  ;;  %57 = vperm.xlu1 %616, %v39_v7   ;;  %v41_v14 = vld [vmem:[%s808_s2 + $0x20] sm:$0xff]  ;;  %v42_v15 = vld [vmem:[%s808_s2 + $0x28] sm:$0xff]  ;;  %v35_v16 = vld [vmem:[%s806_s1 + $0x38] sm:$0xff] }
   0x6   :  { %v43_v17 = vld [vmem:[%s808_s2 + $0x30] sm:$0xff]  ;;  %v44_v18 = vld [vmem:[%s808_s2 + $0x38] sm:$0xff]  ;;  %v235_v19 = vld [vmem:[%s809_s4] sm:$0xff] }
   0x7   :  { %v236_v20 = vld [vmem:[%s809_s4 + $0x8] sm:$0xff]  ;;  %v237_v21 = vld [vmem:[%s809_s4 + $0x10] sm:$0xff]  ;;  %v238_v22 = vld [vmem:[%s809_s4 + $0x18] sm:$0xff] }
   0x8   :  { %554 = vmatmul.mubr.msk.f32.gmra.mrb[2].mxu0 %vm85_vm1, %v31_v8  ;;  %52 = vperm.xlu0 %615, %v38_v10   ;;  %v421_v23 = vld [vmem:[%s810_s5] sm:$0xff]  ;;  %v422_v24 = vld [vmem:[%s810_s5 + $0x8] sm:$0xff]  ;;  %v423_v26 = vld [vmem:[%s810_s5 + $0x10] sm:$0xff] }
   0x9   :  { %556 = vmatprep.mubr.msk.f32.mxu0 %vm85_vm1, %v32_v9  ;;  %62 = vperm.xlu1 %616, %v40_v11   ;;  %v239_v25 = vld [vmem:[%s809_s4 + $0x20] sm:$0xff]  ;;  %v240_v27 = vld [vmem:[%s809_s4 + $0x28] sm:$0xff]  ;;  %v424_v28 = vld [vmem:[%s810_s5 + $0x18] sm:$0xff] }
   0xa   :  { %v241_v29 = vld [vmem:[%s809_s4 + $0x30] sm:$0xff]  ;;  %v425_v30 = vld [vmem:[%s810_s5 + $0x20] sm:$0xff]  ;;  %v242_v31 = vld [vmem:[%s809_s4 + $0x38] sm:$0xff] }
   0xb   :  { %v426_v32 = vld [vmem:[%s810_s5 + $0x28] sm:$0xff]  ;;  %v427_v33 = vld [vmem:[%s810_s5 + $0x30] sm:$0xff]  ;;  %v428_v34 = vld [vmem:[%s810_s5 + $0x38] sm:$0xff] }
   0xc   :  { %557 = vmatmul.mubr.msk.f32.gmra.mrb[4].mxu0 %vm85_vm1, %v33_v12  ;;  %67 = vperm.xlu0 %615, %v41_v14   ;;  %v490_v35 = vld [vmem:[#allocation2] sm:$0x1]  ;;  %v229_v37 = vld [vmem:[%s811_s3 + $0x10] sm:$0xff]  ;;  %v228_v10 = vld [vmem:[%s811_s3 + $0x8] sm:$0xff] }
   0xd   :  { %559 = vmatprep.mubr.msk.f32.mxu0 %vm85_vm1, %v34_v13  ;;  %72 = vperm.xlu1 %616, %v42_v15   ;;  %v227_v36 = vld [vmem:[%s811_s3] sm:$0xff]  ;;  %v230_v11 = vld [vmem:[%s811_s3 + $0x18] sm:$0xff]  ;;  %v232_v13 = vld [vmem:[%s811_s3 + $0x28] sm:$0xff] }
   0xe   :  { %581 = vmatprep.mubr.msk.f32.mxu1 %vm283_vm2, %v229_v37  ;;  %v231_v12 = vld [vmem:[%s811_s3 + $0x20] sm:$0xff]  ;;  %v233_v14 = vld [vmem:[%s811_s3 + $0x30] sm:$0xff]  ;;  %v234_v15 = vld [vmem:[%s811_s3 + $0x38] sm:$0xff] }
  0x10   :  { %560 = vmatmul.mubr.msk.f32.gmra.mrb[6].mxu0 %vm85_vm1, %v35_v16  ;;  %77 = vperm.xlu0 %615, %v43_v17  }
  0x11   :  { %82 = vperm.xlu1 %616, %v44_v18   ;;  %578 = vmatprep.mubr.msk.f32.mxu0 %vm283_vm2, %v227_v36 }
  0x14   :  { %245 = vperm.xlu0 %615, %v235_v19  }
  0x15   :  { %250 = vperm.xlu1 %616, %v236_v20  }
  0x18   :  { %255 = vperm.xlu0 %615, %v237_v21  }
  0x19   :  { %260 = vperm.xlu1 %616, %v238_v22  }
  0x1c   :  { %431 = vperm.xlu0 %615, %v421_v23  }
  0x1d   :  { %436 = vperm.xlu1 %616, %v422_v24  }
  0x20   :  { %265 = vperm.xlu0 %615, %v239_v25  }
  0x21   :  { %441 = vperm.xlu1 %616, %v423_v26  }
  0x24   :  { %270 = vperm.xlu0 %615, %v240_v27  }
  0x25   :  { %446 = vperm.xlu1 %616, %v424_v28  }
  0x28   :  { %275 = vperm.xlu0 %615, %v241_v29  }
  0x29   :  { %451 = vperm.xlu1 %616, %v425_v30  }
  0x2c   :  { %280 = vperm.xlu0 %615, %v242_v31  }
  0x2d   :  { %456 = vperm.xlu1 %616, %v426_v32  }
  0x30   :  { %461 = vperm.xlu0 %615, %v427_v33  }
  0x31   :  { %466 = vperm.xlu1 %616, %v428_v34  }
  0x34   :  { %493 = vperm.xlu0 %615, %v490_v35  }
  0x83   :  { %v48_v38 = vpop.permute.xlu0 %47 }
  0x84   :  { %v58_v39 = vpop.permute.xlu1 %57 }
  0x87   :  { %v53_v40 = vpop.permute.xlu0 %52 }
  0x88   :  { %v63_v41 = vpop.permute.xlu1 %62 }
  0x8b   :  { %v68_v54 = vpop.permute.xlu0 %67 }
  0x8c   :  { %v73_v51 = vpop.permute.xlu1 %72 }
  0x8f   :  { %v78_v2 = vpop.permute.xlu0 %77 }
  0x90   :  { %v83_v63 = vpop.permute.xlu1 %82 }
  0x93   :  { %v246_v16 = vpop.permute.xlu0 %245 }
  0x94   :  { %v251_v17 = vpop.permute.xlu1 %250 }
  0x97   :  { %v256_v18 = vpop.permute.xlu0 %255 }
  0x98   :  { %v261_v19 = vpop.permute.xlu1 %260 }
  0x9b   :  { %v432_v20 = vpop.permute.xlu0 %431 }
  0x9c   :  { %v437_v21 = vpop.permute.xlu1 %436 }
  0x9f   :  { %v266_v22 = vpop.permute.xlu0 %265 }
  0xa0   :  { %v442_v23 = vpop.permute.xlu1 %441 }
  0xa3   :  { %v271_v24 = vpop.permute.xlu0 %270 }
  0xa4   :  { %v447_v25 = vpop.permute.xlu1 %446 }
  0xa7   :  { %v276_v34 = vpop.permute.xlu0 %275 }
  0xd7   :  { %v552_v42 = vpop.f32.mrb[0].mxu0 }
  0xd8   :  { %v186_v43 = vadd.f32 %v552_v42, %v53_v40  ;;  %v180_v44 = vpop.f32.mrb[1].mxu0 }
  0xd9   :  { %v181_v45 = vadd.f32 %v180_v44, %v48_v38 }
  0xda   :  { %v220_v46 = vmax.f32 %v186_v43, 0.0 }
  0xdb   :  { %v219_v47 = vmax.f32 %v181_v45, 0.0  ;;  %v555_v48 = vpop.f32.mrb[2].mxu0 }
  0xdc   :  { %v196_v49 = vadd.f32 %v555_v48, %v63_v41  ;;  %v190_v50 = vpop.f32.mrb[3].mxu0 }
  0xdd   :  { %v590_v52 = vpack.c.bf16 %v220_v46, %v219_v47  ;;  %v191_v53 = vadd.f32 %v190_v50, %v58_v39  ;;  %v452_v39 = vpop.permute.xlu1 %451  ;;  %v281_v50 = vpop.permute.xlu0 %280 }
  0xde   :  { %v222_v55 = vmax.f32 %v196_v49, 0.0 }
  0xdf   :  { %v221_v56 = vmax.f32 %v191_v53, 0.0  ;;  %v558_v57 = vpop.f32.mrb[4].mxu0  ;;  %591 = vmatprep.subr.bf16.mxu0 %v590_v52  ;;  %606 = vmatprep.subr.bf16.mxu1 %v590_v52 }
  0xe0   :  { %v206_v58 = vadd.f32 %v558_v57, %v73_v51  ;;  %v200_v59 = vpop.f32.mrb[5].mxu0  ;;  %593 = vmatpush3.bf16.msra.mxu0 %v590_v52  ;;  %610 = vmatpush3.bf16.msra.mxu1 %v590_v52 }
  0xe1   :  { %v594_v60 = vpack.c.bf16 %v222_v55, %v221_v56  ;;  %v201_v61 = vadd.f32 %v200_v59, %v68_v54  ;;  %v457_v57 = vpop.permute.xlu1 %456 }
  0xe2   :  { %v224_v62 = vmax.f32 %v206_v58, 0.0 }
  0xe3   :  { %v223_v0 = vmax.f32 %v201_v61, 0.0  ;;  %v561_v1 = vpop.f32.mrb[6].mxu0  ;;  %595 = vmatprep.subr.bf16.mxu0 %v594_v60  ;;  %607 = vmatprep.subr.bf16.mxu1 %v594_v60 }
  0xe4   :  { %v216_v3 = vadd.f32 %v561_v1, %v83_v63  ;;  %v210_v4 = vpop.f32.mrb[7].mxu0  ;;  %597 = vmatpush3.bf16.msra.mxu0 %v594_v60  ;;  %611 = vmatpush3.bf16.msra.mxu1 %v594_v60 }
  0xe5   :  { %v598_v5 = vpack.c.bf16 %v224_v62, %v223_v0  ;;  %v211_v6 = vadd.f32 %v210_v4, %v78_v2  ;;  %v462_v0 = vpop.permute.xlu0 %461 }
  0xe6   :  { %v226_v7 = vmax.f32 %v216_v3, 0.0  ;;  %v467_v3 = vpop.permute.xlu1 %466 }
  0xe7   :  { %v225_v8 = vmax.f32 %v211_v6, 0.0  ;;  %599 = vmatprep.subr.bf16.mxu0 %v598_v5  ;;  %608 = vmatprep.subr.bf16.mxu1 %v598_v5  ;;  %v496_v6 = vlaneseq }
  0xe8   :  { %601 = vmatpush3.bf16.msra.mxu0 %v598_v5  ;;  %612 = vmatpush3.bf16.msra.mxu1 %v598_v5 }
  0xe9   :  { %v602_v9 = vpack.c.bf16 %v226_v7, %v225_v8 }
  0xeb   :  { %603 = vmatprep.subr.bf16.mxu0 %v602_v9  ;;  %609 = vmatprep.subr.bf16.mxu1 %v602_v9 }
  0xec   :  { %605 = vmatpush3.bf16.msra.mxu0 %v602_v9  ;;  %613 = vmatpush3.bf16.msra.mxu1 %v602_v9  ;;  %v497_v9 = vshrl.u32 %v496_v6, 7 }
  0xef   :  { %579 = vmatmul.mubr.msk.f32.vlgmr.msra.gmra.mrb[8].mxu0 %vm283_vm2, %v228_v10  ;;  %582 = vmatmul.mubr.msk.f32.vlgmr.msra.gmra.mrb[0].mxu1 %vm283_vm2, %v230_v11 }
  0xf0   :  { %584 = vmatprep.mubr.msk.f32.mxu1 %vm283_vm2, %v231_v12  ;;  %v498_v12 = vsub.s32 0, %v497_v9 }
  0xf3   :  { %585 = vmatmul.mubr.msk.f32.gmra.mrb[2].mxu1 %vm283_vm2, %v232_v13 }
  0xf4   :  { %587 = vmatprep.mubr.msk.f32.mxu1 %vm283_vm2, %v233_v14  ;;  %v494_v14 = vpop.permute.xlu0 %493 }
  0xf7   :  { %588 = vmatmul.mubr.msk.f32.gmra.mrb[4].mxu1 %vm283_vm2, %v234_v15 }
 0x1c2   :  { %v580_v26 = vpop.f32.mrb[8].mxu0  ;;  %v583_v27 = vpop.f32.mrb[0].mxu1 }
 0x1c3   :  { %v380_v28 = vadd.f32 %v580_v26, %v251_v17  ;;  %v390_v29 = vadd.f32 %v583_v27, %v261_v19  ;;  %v374_v30 = vpop.f32.mrb[9].mxu0  ;;  %v384_v31 = vpop.f32.mrb[1].mxu1 }
 0x1c4   :  { %v375_v32 = vadd.f32 %v374_v30, %v246_v16  ;;  %v385_v33 = vadd.f32 %v384_v31, %v256_v18  ;;  %v499_v16 = vrot.slane %v494_v14, %v498_v12 }
 0x1c5   :  { %v414_v35 = vmax.f32 %v380_v28, 0.0  ;;  %v416_v41 = vmax.f32 %v390_v29, 0.0 }
 0x1c6   :  { %v413_v36 = vmax.f32 %v375_v32, 0.0  ;;  %v415_v37 = vmax.f32 %v385_v33, 0.0  ;;  %v586_v38 = vpop.f32.mrb[2].mxu1 }
 0x1c7   :  { %v470_v40 = vmul.f32 %v437_v21, %v414_v35  ;;  %v394_v42 = vpop.f32.mrb[3].mxu1  ;;  %v400_v44 = vadd.f32 %v586_v38, %v271_v24  ;;  %v472_v51 = vmul.f32 %v447_v25, %v416_v41 }
 0x1c8   :  { %v469_v43 = vmul.f32 %v432_v20, %v413_v36  ;;  %v395_v45 = vadd.f32 %v394_v42, %v266_v22  ;;  %v471_v47 = vmul.f32 %v442_v23, %v415_v37 }
 0x1c9   :  { %v418_v54 = vmax.f32 %v400_v44, 0.0 }
 0x1ca   :  { %v477_v46 = vadd.f32 %v470_v40, %v469_v43  ;;  %v417_v48 = vmax.f32 %v395_v45, 0.0  ;;  %v589_v49 = vpop.f32.mrb[4].mxu1 }
 0x1cb   :  { %v404_v52 = vpop.f32.mrb[5].mxu1  ;;  %v410_v55 = vadd.f32 %v589_v49, %v281_v50  ;;  %v474_v61 = vmul.f32 %v457_v57, %v418_v54 }
 0x1cc   :  { %v478_v53 = vadd.f32 %v477_v46, %v471_v47  ;;  %v405_v56 = vadd.f32 %v404_v52, %v276_v34  ;;  %v473_v58 = vmul.f32 %v452_v39, %v417_v48 }
 0x1cd   :  { %v420_v63 = vmax.f32 %v410_v55, 0.0 }
 0x1ce   :  { %v479_v59 = vadd.f32 %v478_v53, %v472_v51  ;;  %v419_v60 = vmax.f32 %v405_v56, 0.0 }
 0x1cf   :  { %v476_v4 = vmul.f32 %v467_v3, %v420_v63 }
 0x1d0   :  { %v480_v62 = vadd.f32 %v479_v59, %v473_v58  ;;  %v475_v1 = vmul.f32 %v462_v0, %v419_v60 }
 0x1d2   :  { %v481_v2 = vadd.f32 %v480_v62, %v474_v61 }
 0x1d4   :  { %v482_v5 = vadd.f32 %v481_v2, %v475_v1 }
 0x1d6   :  { %v483_v7 = vadd.f32 %v482_v5, %v476_v4 }
 0x1d8   :  { %v484_v8 = vrot.slane %v483_v7, 4 }
 0x1da   :  { %v485_v10 = vadd.f32 %v484_v8, %v483_v7 }
 0x1dc   :  { %v486_v11 = vrot.slane %v485_v10, 2 }
 0x1de   :  { %v487_v13 = vadd.f32 %v486_v11, %v485_v10 }
 0x1e0   :  { %v488_v15 = vrot.slane %v487_v13, 1 }
 0x1e2   :  { %v489_v17 = vadd.f32 %v488_v15, %v487_v13 }
 0x1e4   :  { %v500_v18 = vadd.f32 %v499_v16, %v489_v17 }
 0x1e6   :  { %501 = vst [vmem:[%s812_s7] sm:$0x1] %v500_v18 }

</bundles_post_ra>
